<compile_context>
chip_gen: v7x
topology: tpu7x:2x2x1
jax: 0.10.0
libtpu: 0.0.40
codegen_flags: <defaults>
</compile_context>

<pallas_src>
import functools

import jax
import jax.numpy as jnp
from jax.experimental import pallas as pl
from jax.experimental.pallas import tpu as pltpu

_LANE = 128  # vreg lane width


def _round_up(n, m):
    return ((n + m - 1) // m) * m


def _sublane(itemsize):
    return {4: 8, 2: 16, 1: 32}.get(itemsize, 8)


def _pad2d(a, rows, cols):
    r, c = a.shape
    if (r, c) == (rows, cols):
        return a
    return jnp.pad(a, ((0, rows - r), (0, cols - c)))


# ---------------------------------------------------------------------------
# Generation-aware VMEM policy.
# ---------------------------------------------------------------------------
@functools.lru_cache(maxsize=1)
def _vmem_caps():
    """(residency_budget_bytes, hard_vmem_limit_bytes) for this TPU generation.

    ~75% of reported VMEM for the residency plan, ~90% as the scoped-VMEM cap:
    v5e/v6e (128 MiB) -> ~96 MiB budget; v7x (64 MiB per TC) -> ~48 MiB.
    """
    try:
        info = pltpu.get_tpu_info()
        cap = int(getattr(info, "vmem_capacity_bytes", 0) or 0)
        if cap > 0:
            return int(cap * 0.75), int(cap * 0.90)
    except Exception:
        pass
    return 24 << 20, 48 << 20  # conservative cross-generation fallback


@functools.lru_cache(maxsize=1)
def _buffered_one_supported():
    """Probe once whether pipeline_mode=pl.Buffered(1) lowers on this jax/Mosaic."""
    try:
        spec = pl.BlockSpec((8, _LANE), lambda i: (0, 0),
                            pipeline_mode=pl.Buffered(1))

        def _k(x_ref, o_ref):
            o_ref[...] = x_ref[...]

        x = jnp.zeros((8, _LANE), jnp.float32)
        out = pl.pallas_call(
            _k,
            out_shape=jax.ShapeDtypeStruct((8, _LANE), jnp.float32),
            grid=(1,),
            in_specs=[spec],
            out_specs=pl.BlockSpec((8, _LANE), lambda i: (0, 0)),
        )(x)
        jax.block_until_ready(out)
        return True
    except Exception:
        return False


def _resident_weight_spec(shape):
    """Constant index_map keeps a weight resident in VMEM across the batch grid;
    Buffered(1) avoids double-buffering a block that never changes."""
    if _buffered_one_supported():
        return pl.BlockSpec(shape, lambda i: (0, 0), pipeline_mode=pl.Buffered(1))
    return pl.BlockSpec(shape, lambda i: (0, 0))


# ---------------------------------------------------------------------------
# Footprint model & batch-tile selection.
# ---------------------------------------------------------------------------
def _footprint_bytes(tm, dims_p, w_bytes, itemsize):
    """VMEM bytes with tm-row batch tiles: resident weights, double-buffered
    input/output activation tiles, BOTH live f32 intermediates of the widest
    consecutive stage, plus one downcast copy (bf16 path)."""
    io = 2 * tm * dims_p[0] * itemsize + 2 * tm * dims_p[-1] * itemsize
    widest_pair = max(dims_p[i] + dims_p[i + 1] for i in range(len(dims_p) - 1))
    inter = tm * widest_pair * 4 + tm * max(dims_p) * itemsize
    return w_bytes + io + inter


_TILE_CANDIDATES = (2048, 1024, 512, 256, 128, 64, 32, 16, 8)


def _pick_batch_tile(batch, dims_p, w_bytes, itemsize, budget):
    """Largest batch tile whose modeled footprint fits the residency budget."""
    sub = _sublane(itemsize)
    tm = batch
    for cand in _TILE_CANDIDATES:
        if cand >= batch:
            tm = batch  # single full-extent block (always a legal block dim)
        else:
            tm = max(sub, (cand // sub) * sub)
        if _footprint_bytes(tm, dims_p, w_bytes, itemsize) <= budget:
            return tm
    return tm


# ---------------------------------------------------------------------------
# Kernel + per-group launcher.
# ---------------------------------------------------------------------------
def _chained_matmul_kernel(*refs):
    """refs = (x_ref, w1_ref, ..., wk_ref, o_ref): (((x@W1)@W2)...@Wk) on the MXU.

    Operands stay in their native dtype (bf16 stays bf16); each dot accumulates
    in f32 via preferred_element_type; intermediates are cast back to the
    compute dtype between stages (bf16 chains round once per stage).
    """
    x_ref, o_ref = refs[0], refs[-1]
    w_refs = refs[1:-1]
    h = x_ref[...]
    compute_dtype = h.dtype
    n = len(w_refs)
    for idx, w_ref in enumerate(w_refs):
        h = jnp.dot(h, w_ref[...], preferred_element_type=jnp.float32)
        if idx + 1 < n:
            h = h.astype(compute_dtype)
    o_ref[...] = h.astype(o_ref.dtype)


def _apply_group(x, weights):
    """One pallas_call applying a residency group of chained weights to x."""
    batch, d_in = x.shape
    dims_p = [weights[0].shape[0]] + [w.shape[1] for w in weights]
    if d_in != dims_p[0]:
        raise ValueError("x feature dim does not match first chained weight")

    itemsize = jnp.dtype(x.dtype).itemsize
    budget, hard_cap = _vmem_caps()
    w_mult = 1 if _buffered_one_supported() else 2
    w_bytes_raw = sum(w.size * jnp.dtype(w.dtype).itemsize for w in weights)
    w_bytes = w_mult * w_bytes_raw

    tm = _pick_batch_tile(batch, dims_p, w_bytes, itemsize, budget)
    # Ragged batch tail is handled by Pallas boundary masking on the last block:
    # no wrapper-side jnp.pad(x) and no output slice (rows are independent).
    grid = (pl.cdiv(batch, tm),)

    in_specs = [pl.BlockSpec((tm, dims_p[0]), lambda i: (i, 0))]
    in_specs += [_resident_weight_spec(w.shape) for w in weights]
    out_specs = pl.BlockSpec((tm, dims_p[-1]), lambda i: (i, 0))

    fp = _footprint_bytes(tm, dims_p, w_bytes, itemsize)
    vmem_limit = None
    if fp > (16 << 20):
        vmem_limit = int(min(fp + (4 << 20), hard_cap))
    # TODO(synk): a single stage whose weight alone exceeds the per-TC budget
    # still needs K-streaming (inner contraction grid axis + f32 VMEM
    # accumulator with pl.when init/finalize) instead of raising vmem_limit.

    flops = 2 * batch * sum(dims_p[i] * dims_p[i + 1] for i in range(len(dims_p) - 1))
    bytes_accessed = batch * (dims_p[0] + dims_p[-1]) * itemsize + w_bytes_raw

    return pl.pallas_call(
        _chained_matmul_kernel,
        out_shape=jax.ShapeDtypeStruct((batch, dims_p[-1]), x.dtype),
        grid=grid,
        in_specs=in_specs,
        out_specs=out_specs,
        compiler_params=pltpu.CompilerParams(
            dimension_semantics=("parallel",),
            vmem_limit_bytes=vmem_limit,
        ),
        cost_estimate=pl.CostEstimate(
            flops=flops, transcendentals=0, bytes_accessed=bytes_accessed),
    )(x, *weights)


def _chained_apply(x, weight_groups):
    if x.ndim != 2:
        raise ValueError("expected x of shape (batch, features)")
    for group in weight_groups:
        x = _apply_group(x, group)
    return x


_chained_apply_jit = jax.jit(_chained_apply)


# ---------------------------------------------------------------------------
# Construction-time weight preparation (fold / pad / group).
# ---------------------------------------------------------------------------
def _validate_chain(weights):
    d = weights[0].shape[0]
    for w in weights:
        if w.ndim != 2 or w.shape[0] != d:
            raise ValueError("incompatible chained weight shapes")
        d = w.shape[1]


def _fold_stages(weights):
    """Fold adjacent weights whenever it lowers per-call FLOPs (tiny bottleneck
    dims barely fill the MXU and each extra stage is a serial MXU dependency).
    Runs once in plain XLA at construction time."""
    folded = [weights[0]]
    for w in weights[1:]:
        prev = folded[-1]
        d_in, d_mid = prev.shape
        d_out = w.shape[1]
        if d_in * d_out < d_in * d_mid + d_mid * d_out:
            folded[-1] = jnp.dot(
                prev, w, preferred_element_type=jnp.float32).astype(prev.dtype)
        else:
            folded.append(w)
    return folded


def _pad_internal(weights):
    """Zero-pad only the INTERNAL chain dims to multiples of 128 (exact: padded
    rows/cols contribute 0). The overall input/output feature dims stay at
    their true sizes so the wrapper never pads x or slices the result."""
    dims = [weights[0].shape[0]] + [w.shape[1] for w in weights]
    dims_p = list(dims)
    for i in range(1, len(dims) - 1):
        dims_p[i] = _round_up(dims[i], _LANE)
    return tuple(_pad2d(w, dims_p[i], dims_p[i + 1]) for i, w in enumerate(weights))


def _group_for_residency(weights, budget):
    """Split the chain into consecutive groups whose weights fit the residency
    budget; one fused pallas_call per group (intermediates between groups go
    through HBM only when the chain is too large to keep fully resident)."""
    groups, cur, cur_bytes = [], [], 0
    cap = int(budget * 0.6)  # leave room for activation tiles / intermediates
    for w in weights:
        wb = w.size * jnp.dtype(w.dtype).itemsize
        if cur and cur_bytes + wb > cap:
            groups.append(tuple(cur))
            cur, cur_bytes = [], 0
        cur.append(w)
        cur_bytes += wb
    groups.append(tuple(cur))
    return tuple(groups)


def _build_groups(weights, fold):
    weights = tuple(jnp.asarray(w) for w in weights)
    _validate_chain(weights)
    if fold and len(weights) > 1:
        weights = tuple(_fold_stages(list(weights)))
    weights = _pad_internal(weights)
    budget, _ = _vmem_caps()
    return _group_for_residency(weights, budget)


# ---------------------------------------------------------------------------
# Operator classes mirroring effop._linop.
# ---------------------------------------------------------------------------
class LinearOperator:
    """Abstract base class mirroring effop._linop.LinearOperator."""

    def forward(self, y):
        raise NotImplementedError

    def adjoint(self, y):
        raise NotImplementedError

    def reg_denom(self, x):
        raise NotImplementedError


class DenseLinearOperator(LinearOperator):
    """Concrete LinearOperator: L(x) = x @ W;  L^H(y) = y @ conj(W).T."""

    def __init__(self, weight):
        self.weight = jnp.asarray(weight)
        self._fwd = _build_groups((self.weight,), fold=False)
        self._adj = _build_groups((jnp.conj(self.weight).T,), fold=False)

    def forward(self, x):
        return _chained_apply_jit(x, self._fwd)

    def adjoint(self, y):
        return _chained_apply_jit(y, self._adj)


class ChainedLinearOperator(LinearOperator):
    """JAX/Pallas port of effop._linop.ChainedLinearOperator.

    forward(x) = linop_k(... linop_1(x) ...)        (fused Pallas kernel(s))
    adjoint(y) = linop_1^H(... linop_k^H(y) ...)    (fused; weights conj-transposed
                 once at construction — no in-kernel .T)
    """

    # TODO(synk): only dense linops (exposing `.weight`) can be fused into the
    # chained kernel; arbitrary LinearOperator subclasses fall outside this port.
    def __init__(self, linops, fold_stages=True):
        self._linops = list(linops)
        if not self._linops:
            raise ValueError("ChainedLinearOperator needs at least one linop")
        ws = tuple(lo.weight for lo in self._linops)
        self._fwd = _build_groups(ws, fold=fold_stages)
        self._adj = _build_groups(
            tuple(jnp.conj(w).T for w in reversed(ws)), fold=fold_stages)

    def forward(self, x):
        return _chained_apply_jit(x, self._fwd)

    def adjoint(self, y):
        return _chained_apply_jit(y, self._adj)


if __name__ == "__main__":
    key = jax.random.PRNGKey(0)
    k_x, k1, k2, k3, k_y = jax.random.split(key, 5)

    batch = 8
    dims = (32, 64, 16, 32)  # chain: 32 -> 64 -> 16 -> 32

    x = jax.random.normal(k_x, (batch, dims[0]), dtype=jnp.float32)
    w1 = 0.1 * jax.random.normal(k1, (dims[0], dims[1]), dtype=jnp.float32)
    w2 = 0.1 * jax.random.normal(k2, (dims[1], dims[2]), dtype=jnp.float32)
    w3 = 0.1 * jax.random.normal(k3, (dims[2], dims[3]), dtype=jnp.float32)

    linops = [DenseLinearOperator(w1),
              DenseLinearOperator(w2),
              DenseLinearOperator(w3)]

    chain = ChainedLinearOperator(linops)                        # stage folding on
    chain_nofold = ChainedLinearOperator(linops, fold_stages=False)  # multi-stage fused path

    # Forward pass (both paths) vs. dense reference.
    ref_f = ((x @ w1) @ w2) @ w3
    out = chain.forward(x)
    jax.block_until_ready(out)
    out_nf = chain_nofold.forward(x)
    jax.block_until_ready(out_nf)
    assert out.shape == (batch, dims[-1])
    assert jnp.allclose(out, ref_f, atol=1e-4, rtol=1e-4)
    assert jnp.allclose(out_nf, ref_f, atol=1e-4, rtol=1e-4)

    # Adjoint pass (reverse-order adjoints) vs. dense reference.
    y = jax.random.normal(k_y, (batch, dims[-1]), dtype=jnp.float32)
    ref_a = ((y @ w3.T) @ w2.T) @ w1.T
    adj = chain.adjoint(y)
    jax.block_until_ready(adj)
    adj_nf = chain_nofold.adjoint(y)
    jax.block_until_ready(adj_nf)
    assert adj.shape == (batch, dims[0])
    assert jnp.allclose(adj, ref_a, atol=1e-4, rtol=1e-4)
    assert jnp.allclose(adj_nf, ref_a, atol=1e-4, rtol=1e-4)

    print("KERNEL_OK")
</pallas_src>

<mosaic_0001>
module attributes {stable_mosaic.version = 11 : i64} {
  func.func @_chained_matmul_kernel(%arg0: i32, %arg1: memref<8x32xf32, #tpu.memory_space<vmem>>, %arg2: memref<32x128xf32, #tpu.memory_space<vmem>>, %arg3: memref<128x32xf32, #tpu.memory_space<vmem>>, %arg4: memref<8x32xf32, #tpu.memory_space<vmem>>) attributes {dimension_semantics = [#tpu.dimension_semantics<parallel>], iteration_bounds = array<i64: 1>, scalar_prefetch = 0 : i64, scratch_operands = 0 : i64, tpu.core_type = #tpu.core_type<tc>, window_params = [{transform_indices = @transform_0, window_bounds = array<i64: 8, 32>}, {pipeline_mode = #tpu.pipeline_mode<synchronous>, transform_indices = @transform_1, window_bounds = array<i64: 32, 128>}, {pipeline_mode = #tpu.pipeline_mode<synchronous>, transform_indices = @transform_2, window_bounds = array<i64: 128, 32>}, {transform_indices = @transform_3, window_bounds = array<i64: 8, 32>}]} {
    %c0 = arith.constant 0 : index
    %c0_0 = arith.constant 0 : index
    %0 = vector.load %arg1[%c0, %c0_0] : memref<8x32xf32, #tpu.memory_space<vmem>>, vector<8x32xf32>
    %c0_1 = arith.constant 0 : index
    %c0_2 = arith.constant 0 : index
    %1 = vector.load %arg2[%c0_1, %c0_2] : memref<32x128xf32, #tpu.memory_space<vmem>>, vector<32x128xf32>
    %cst = arith.constant dense<0.000000e+00> : vector<8x128xf32>
    %2 = tpu.matmul %0, %1, %cst {dimension_numbers = #tpu.dot_dimension_numbers<[1], [0], [0], [1], [0, 0, 1, 1], [], []>} : vector<8x32xf32>, vector<32x128xf32>, vector<8x128xf32> -> vector<8x128xf32>
    %c0_3 = arith.constant 0 : index
    %c0_4 = arith.constant 0 : index
    %3 = vector.load %arg3[%c0_3, %c0_4] : memref<128x32xf32, #tpu.memory_space<vmem>>, vector<128x32xf32>
    %cst_5 = arith.constant dense<0.000000e+00> : vector<8x32xf32>
    %4 = tpu.matmul %2, %3, %cst_5 {dimension_numbers = #tpu.dot_dimension_numbers<[1], [0], [0], [1], [0, 0, 1, 1], [], []>} : vector<8x128xf32>, vector<128x32xf32>, vector<8x32xf32> -> vector<8x32xf32>
    %c0_6 = arith.constant 0 : index
    %c0_7 = arith.constant 0 : index
    %5 = vector.load %arg4[%c0_6, %c0_7] : memref<8x32xf32, #tpu.memory_space<vmem>>, vector<8x32xf32>
    tpu.vector_store %arg4[%c0_6, %c0_7], %4 {strides = array<i32>} : memref<8x32xf32, #tpu.memory_space<vmem>>, vector<8x32xf32>,
    return
  }
  func.func @transform_0(%arg0: i32) -> (i32, i32) {
    %c0_i32 = arith.constant 0 : i32
    %c0_i32_0 = arith.constant 0 : i32
    return %arg0, %c0_i32 : i32, i32
  }
  func.func @transform_1(%arg0: i32) -> (i32, i32) {
    %c0_i32 = arith.constant 0 : i32
    %c0_i32_0 = arith.constant 0 : i32
    %c0_i32_1 = arith.constant 0 : i32
    return %c0_i32, %c0_i32_0 : i32, i32
  }
  func.func @transform_2(%arg0: i32) -> (i32, i32) {
    %c0_i32 = arith.constant 0 : i32
    %c0_i32_0 = arith.constant 0 : i32
    %c0_i32_1 = arith.constant 0 : i32
    return %c0_i32, %c0_i32_0 : i32, i32
  }
  func.func @transform_3(%arg0: i32) -> (i32, i32) {
    %c0_i32 = arith.constant 0 : i32
    %c0_i32_0 = arith.constant 0 : i32
    return %arg0, %c0_i32 : i32, i32
  }
}

</mosaic_0001>

<bundles_post_ra>
// kernel: _chained_apply.1
= control target key start
LH: loop header
LB: loop body
LE: loop exit
PB: predicated region body
PF: predicated region fallthrough
CT: control target
= control target key end

     0   :  { %v322_v3 = vmov 0.0|0.0   ;;  %vm323_vm0 = vmmov 0   ;;  %v324_v6 = vmov 0.0   ;;  %vm20_vm1 = vcmask 261120   ;;  %s423_s0 = inlined_call_operand.vmem [shape: f32[8,32], index: 0, kind: input, shape index: {}]   ;;  %s424_s1 = inlined_call_operand.vmem [shape: f32[32,128], index: 1, kind: input, shape index: {}]   ;;  %s425_s2 = inlined_call_operand.vmem [shape: f32[128,32], index: 2, kind: input, shape index: {}]   ;;  %s426_s3 = inlined_call_operand.hbm [shape: f32[8,32], index: 3, kind: output, shape index: {}]  }
   0x1   :  { %v16_v0 = vld [vmem:[%s424_s1] sm:$0xff]  ;;  %v17_v1 = vld [vmem:[%s424_s1 + $0x8] sm:$0xff]  ;;  %v18_v2 = vld [vmem:[%s424_s1 + $0x10] sm:$0xff]  ;;  %264 = vmatprep.subr.bf16.mxu0 %v322_v3  ;;  %226 = vmatprep.mubr.msk.f32.mxu0 %vm323_vm0, %v324_v6 }
   0x2   :  { %v265_v4 = vpack.c.bf16 %v17_v1, %v16_v0  ;;  %v19_v5 = vld [vmem:[%s424_s1 + $0x18] sm:$0xff]  ;;  %v94_v7 = vld [vmem:[%s425_s2] sm:$0xff]  ;;  %270 = vmatprep.subr.bf16.mxu1 %v322_v3  ;;  %v95_v8 = vld [vmem:[%s425_s2 + $0x8] sm:$0xff]  ;;  %261 = vmatprep.mubr.msk.f32.mxu1 %vm323_vm0, %v324_v6 }
   0x3   :  { %v96_v9 = vld [vmem:[%s425_s2 + $0x10] sm:$0xff]  ;;  %v97_v10 = vld [vmem:[%s425_s2 + $0x18] sm:$0xff]  ;;  %v268_v11 = vpack.c.bf16 %v19_v5, %v18_v2  ;;  %v271_v12 = vpack.c.bf16 %v95_v8, %v94_v7  ;;  %v98_v14 = vld [vmem:[%s425_s2 + $0x20] sm:$0xff] }
   0x4   :  { %266 = vmatpush3.bf16.msra.mxu0 %v265_v4  ;;  %v274_v13 = vpack.c.bf16 %v97_v10, %v96_v9  ;;  %v99_v15 = vld [vmem:[%s425_s2 + $0x28] sm:$0xff]  ;;  %v15_v16 = vld [vmem:[%s423_s0] sm:$0xff] }
   0x5   :  { %267 = vmatprep.subr.bf16.mxu0 %v322_v3  ;;  %272 = vmatpush3.bf16.msra.mxu1 %v271_v12 }
   0x6   :  { %273 = vmatprep.subr.bf16.mxu1 %v322_v3 }
   0x8   :  { %269 = vmatpush3.bf16.msra.mxu0 %v268_v11 }
   0x9   :  { %8 = vsyncpa [#allocation3], 0  ;;  %275 = vmatpush3.bf16.msra.mxu1 %v274_v13  ;;  %v277_v17 = vpack.c.bf16 %v99_v15, %v98_v14  ;;  %v100_v18 = vld [vmem:[%s425_s2 + $0x30] sm:$0xff]  ;;  %v101_v19 = vld [vmem:[%s425_s2 + $0x38] sm:$0xff]  ;;  %s325_s25 = smov [#allocation2]  }
   0xa   :  { %276 = vmatprep.subr.bf16.mxu1 %v322_v3  ;;  %v280_v20 = vpack.c.bf16 %v101_v19, %v100_v18  ;;  %v102_v21 = vld [vmem:[%s425_s2 + $0x40] sm:$0xff]  ;;  %v103_v22 = vld [vmem:[%s425_s2 + $0x48] sm:$0xff]  ;;  %v104_v24 = vld [vmem:[%s425_s2 + $0x50] sm:$0xff]  ;;  %s187_s26 = sshll.u32 %s325_s25, 4  ;;  %s188_s26 = int_to_ptr.vmem [resolvable:$true] %s187_s26 }
   0xb   :  { %227 = vmatmul.mubr.msk.f32.vlgmr.msra.gmra.mrb[0].mxu0 %vm20_vm1, %v15_v16  ;;  %v283_v23 = vpack.c.bf16 %v103_v22, %v102_v21  ;;  %v105_v25 = vld [vmem:[%s425_s2 + $0x58] sm:$0xff]  ;;  %v106_v27 = vld [vmem:[%s425_s2 + $0x60] sm:$0xff]  ;;  %v107_v28 = vld [vmem:[%s425_s2 + $0x68] sm:$0xff]  ;;  %s298_s27 = scalar_lea.vmem %s188_s26, 128  ;;  %p303_p1 = scmp.lt.s32.totalorder %s188_s26, %s188_s26 }
   0xc   :  { %v286_v26 = vpack.c.bf16 %v105_v25, %v104_v24  ;;  %v289_v29 = vpack.c.bf16 %v107_v28, %v106_v27  ;;  %v108_v30 = vld [vmem:[%s425_s2 + $0x70] sm:$0xff]  ;;  %v109_v31 = vld [vmem:[%s425_s2 + $0x78] sm:$0xff]  ;;  %p299_p0 = scmp.ne.s32.totalorder %s188_s26, %s298_s27  ;;  %p304_p2 = scmp.lt.s32.totalorder %s298_s27, %s298_s27 }
   0xd   :  { %278 = vmatpush3.bf16.msra.mxu1 %v277_v17  ;;  %v292_v32 = vpack.c.bf16 %v109_v31, %v108_v30 }
   0xe   :  { %279 = vmatprep.subr.bf16.mxu1 %v322_v3  ;;  %p305_p3 = por %p304_p2, %p303_p1 }
  0x10   :  { %p306_p4 = pnand %p305_p3, %p299_p0 }
  0x11   :  { %281 = vmatpush3.bf16.msra.mxu1 %v280_v20 }
  0x12   :  { %282 = vmatprep.subr.bf16.mxu1 %v322_v3 }
  0x15   :  { %284 = vmatpush3.bf16.msra.mxu1 %v283_v23 }
  0x16   :  { %285 = vmatprep.subr.bf16.mxu1 %v322_v3 }
  0x19   :  { %287 = vmatpush3.bf16.msra.mxu1 %v286_v26 }
  0x1a   :  { %288 = vmatprep.subr.bf16.mxu1 %v322_v3 }
  0x1d   :  { %290 = vmatpush3.bf16.msra.mxu1 %v289_v29 }
  0x1e   :  { %291 = vmatprep.subr.bf16.mxu1 %v322_v3 }
  0x21   :  { %293 = vmatpush3.bf16.msra.mxu1 %v292_v32 }
  0xde   :  { %v90_v33 = vpop.f32.mrb[0].mxu0 }
  0xdf   :  { %v228_v34 = vpop.f32.mrb[1].mxu0  ;;  %262 = vmatmul.mubr.f32.vlgmr.msra.gmra.mrb[0].mxu1 %v90_v33 }
 0x1b2   :  { %v176_v35 = vpop.f32.mrb[0].mxu1 }
 0x1b3   :  { %180 = vst.msk [vmem:[#allocation2] sm:$0xff] %vm20_vm1, %v176_v35  ;;  %v263_v36 = vpop.f32.mrb[1].mxu1 }
 0x1b4   :  { %309 = shalt.err (!%p306_p4)
}
 0x1b5   :  { %s310_s28 = scalar_lea.hbm %s426_s3, 128 }
 0x1b6   :  { %p311_p5 = scmp.ne.s32.totalorder %s426_s3, %s310_s28  ;;  %p314_p6 = scmp.lt.u32.totalorder %s310_s28, %s426_s3 }
 0x1b8   :  { %p316_p7 = pnand %p314_p6, %p311_p5 }
 0x1ba   :  { %319 = shalt.err (!%p316_p7)
}
 0x1bb   :  { %190 = dma.vmem_to_hbm [thread:$0]  %s188_s26, 128, %s426_s3, [#allocation3]  }
 0x1bc   :  { %320 = dma.done.wait [#allocation3], 128  }
 0x1bd   :  { %321 = vsyncadd [#allocation3], 4294967168 }
 0x1be   :  { %194 = vsyncpa [#allocation3], 1 }

</bundles_post_ra>
